<compile_context>
chip_gen: v7x
topology: tpu7x:2x2x1
jax: 0.10.0
libtpu: 0.0.40
codegen_flags: <defaults>
</compile_context>

<pallas_src>
import functools

import jax
import jax.numpy as jnp
from jax.experimental import pallas as pl
from jax.experimental.pallas import tpu as pltpu

ATTR_DIM = 5
ATTR_NUM = 18
HIDDEN_DIM = 100
USER_EMB_DIM = ATTR_NUM
FEAT_DIM = ATTR_NUM * ATTR_DIM          # 90
VOCAB = 2 * ATTR_NUM                    # 36 rows in the embedding table

HPAD = 128                              # lane-dense hidden / output width
ONEHOT_DIM = ATTR_NUM * VOCAB           # 648: one 36-wide one-hot band per attribute slot
BIAS_LANE = ONEHOT_DIM                  # lane 648: constant-one lane that selects b1
ONEHOT_PAD = 768                        # 648 rounded up to a multiple of 128

DEFAULT_TILE_B = 512                    # max rows per grid step


# ----------------------------------------------------------------------------- params
def _xavier_normal(key, shape):
    """Matches torch.nn.init.xavier_normal_ for a 2-D tensor of shape=(fan_out, fan_in)."""
    fan_out, fan_in = shape
    std = (2.0 / (fan_in + fan_out)) ** 0.5
    return std * jax.random.normal(key, shape, dtype=jnp.float32)


def init_generator_params(key):
    """Deterministic parameter init mirroring Generator.init_params()."""
    keys = jax.random.split(key, 7)
    emb = _xavier_normal(keys[0], (VOCAB, ATTR_DIM))             # (36, 5)
    # torch stores Linear weight as (out, in); we keep (in, out) so y = x @ W + b.
    w1 = _xavier_normal(keys[1], (HIDDEN_DIM, FEAT_DIM)).T       # (90, 100)
    b1 = _xavier_normal(keys[2], (1, HIDDEN_DIM))[0]             # (100,)
    w2 = _xavier_normal(keys[3], (HIDDEN_DIM, HIDDEN_DIM)).T     # (100, 100)
    b2 = _xavier_normal(keys[4], (1, HIDDEN_DIM))[0]             # (100,)
    w3 = _xavier_normal(keys[5], (USER_EMB_DIM, HIDDEN_DIM)).T   # (100, 18)
    b3 = _xavier_normal(keys[6], (1, USER_EMB_DIM))[0]           # (18,)
    return dict(emb=emb, w1=w1, b1=b1, w2=w2, b2=b2, w3=w3, b3=b3)


def prepare_generator_kernel_params(params):
    """One-time host-side packing: fold emb@W1 (+b1) into the gather matrix and pad
    everything to 128-lane-dense, VMEM-resident blocks."""
    f32 = jnp.float32
    emb = params["emb"].astype(f32)                              # (36, 5)

    # repmat[a, l] = 1 iff lane l lies in slot a's 36-wide band.  {0,1} and ids<=35
    # are exact in bf16, so the replication matmul is a single exact MXU pass.
    repmat = jnp.zeros((ATTR_NUM, ONEHOT_PAD), f32)
    repmat = repmat.at[:, :ONEHOT_DIM].set(
        jnp.kron(jnp.eye(ATTR_NUM, dtype=f32), jnp.ones((1, VOCAB), f32)))
    repmat = repmat.astype(jnp.bfloat16)

    # lmod[l] = within-band index 0..35 for valid lanes; lane 648 is the constant-one
    # bias lane (replicated value there is exactly 0, and 0 == 0); remaining pad = -1.
    lmod = jnp.full((1, ONEHOT_PAD), -1.0, f32)
    lmod = lmod.at[0, :ONEHOT_DIM].set(jnp.tile(jnp.arange(VOCAB, dtype=f32), ATTR_NUM))
    lmod = lmod.at[0, BIAS_LANE].set(0.0)

    # Fused gather+layer1 matrix: G1[a*36+v, :] = emb[v] @ W1[a*5:(a+1)*5, :];
    # row 648 carries b1.  Computed in full f32 precision (prep-time only).
    kron_e = jnp.kron(jnp.eye(ATTR_NUM, dtype=f32), emb)                    # (648, 90)
    g1_core = jnp.dot(kron_e, params["w1"].astype(f32),
                      precision=jax.lax.Precision.HIGHEST)                  # (648, 100)
    g1 = jnp.zeros((ONEHOT_PAD, HPAD), f32)
    g1 = g1.at[:ONEHOT_DIM, :HIDDEN_DIM].set(g1_core)
    g1 = g1.at[BIAS_LANE, :HIDDEN_DIM].set(params["b1"].astype(f32))

    # Zero-padded Linear weights (in, out) -> lane-dense (128, 128).
    w2p = jnp.zeros((HPAD, HPAD), f32).at[:HIDDEN_DIM, :HIDDEN_DIM].set(params["w2"])
    w3p = jnp.zeros((HPAD, HPAD), f32).at[:HIDDEN_DIM, :USER_EMB_DIM].set(params["w3"])

    # Remaining biases (b2, b3) in one resident block.
    bias = jnp.zeros((2, HPAD), f32)
    bias = bias.at[0, :HIDDEN_DIM].set(params["b2"])
    bias = bias.at[1, :USER_EMB_DIM].set(params["b3"])

    return dict(repmat=repmat, lmod=lmod, g1=g1, w2p=w2p, w3p=w3p, bias=bias)


# ----------------------------------------------------------------------------- kernel
def _generator_kernel(ids_ref, rep_ref, lmod_ref, g1_ref, w2_ref, w3_ref, b_ref, o_ref):
    # ids_ref : (TILE_B, 18) int32   -- streamed attribute ids in [0, 36)
    # rep_ref : (18, 768)  bf16      -- 0/1 band-replication matrix        (resident)
    # lmod_ref: (1, 768)   f32       -- within-band lane index / bias lane (resident)
    # g1_ref  : (768, 128) f32       -- fused kron(I,emb)@W1 (+ b1 row)    (resident)
    # w2_ref  : (128, 128) f32, w3_ref: (128, 128) f32                     (resident)
    # b_ref   : (2, 128)   f32       -- rows b2, b3 (zero padded)          (resident)
    # o_ref   : (TILE_B, 128) f32    -- lane-dense output; wrapper slices [:, :18]

    # --- fused embedding gather + layer 1 -------------------------------------
    # ids <= 35 and repmat in {0,1} are exact in bf16 and each repmat column has a
    # single nonzero, so id_rep is bit-exact: id_rep[b, 36a+v] = attr_id[b, a],
    # and id_rep[b, 648] = 0 (constant-one bias lane after the compare).
    ids_bf = ids_ref[...].astype(jnp.bfloat16)
    id_rep = jnp.dot(ids_bf, rep_ref[...], preferred_element_type=jnp.float32)
    onehot = (id_rep == lmod_ref[...]).astype(jnp.float32)          # (tb, 768) multi-hot
    # h1[b,:] = tanh(sum_a emb[id[b,a]] @ W1_a + b1)  (W1 and b1 folded into G1).
    h1 = jnp.tanh(jnp.dot(onehot, g1_ref[...],
                          preferred_element_type=jnp.float32))      # (tb, 128)

    # --- layers 2 and 3 (lane-dense tiles; padded lanes stay exactly zero-driven) ---
    b_all = b_ref[...]
    h2 = jnp.tanh(jnp.dot(h1, w2_ref[...],
                          preferred_element_type=jnp.float32) + b_all[0:1, :])
    o_ref[...] = jnp.tanh(jnp.dot(h2, w3_ref[...],
                                  preferred_element_type=jnp.float32) + b_all[1:2, :])


# ----------------------------------------------------------------------------- wrapper
def _cdiv(a, b):
    return -(-a // b)


def _round_up(x, m):
    return ((x + m - 1) // m) * m


def _choose_tiling(batch, max_tile):
    """Pick (tile_b, padded_batch, steps) so that padding waste is < one tile and
    batches with enough work get >= 2 grid steps (v7x megacore can split them)."""
    min_steps = 2 if batch >= 16 else 1
    steps = max(_cdiv(batch, max_tile), min_steps)
    tb = _round_up(_cdiv(batch, steps), 8)          # sublane-aligned batch tile
    steps = _cdiv(batch, tb)
    return tb, tb * steps, steps


@functools.partial(jax.jit, static_argnames=("tile_b",))
def generator_forward(kparams, attr_id, tile_b=DEFAULT_TILE_B):
    """attr_id: int32 [B, attr_num], values in [0, 2*attr_num).  Returns f32 [B, 18]."""
    B = attr_id.shape[0]
    tb, bp, _ = _choose_tiling(B, tile_b)

    ids = attr_id.astype(jnp.int32)
    if bp != B:
        ids = jnp.pad(ids, ((0, bp - B), (0, 0)))   # pad with index 0 (valid row)

    resident = lambda shape: pl.BlockSpec(shape, lambda i: (0, 0))

    out = pl.pallas_call(
        _generator_kernel,
        out_shape=jax.ShapeDtypeStruct((bp, HPAD), jnp.float32),
        grid=(bp // tb,),
        in_specs=[
            pl.BlockSpec((tb, ATTR_NUM), lambda i: (i, 0)),     # streamed attr_id tile
            resident((ATTR_NUM, ONEHOT_PAD)),                   # repmat (bf16)
            resident((1, ONEHOT_PAD)),                          # lmod
            resident((ONEHOT_PAD, HPAD)),                       # fused G1 (+b1)
            resident((HPAD, HPAD)),                             # w2p
            resident((HPAD, HPAD)),                             # w3p (lane-dense)
            resident((2, HPAD)),                                # biases b2, b3
        ],
        out_specs=pl.BlockSpec((tb, HPAD), lambda i: (i, 0)),   # lane-dense output
        compiler_params=pltpu.CompilerParams(
            dimension_semantics=("parallel",),                  # megacore-shard the batch
            vmem_limit_bytes=32 * 1024 * 1024,                  # safe on v5e/v6e/v7x
        ),
    )(ids, kparams["repmat"], kparams["lmod"], kparams["g1"],
      kparams["w2p"], kparams["w3p"], kparams["bias"])
    return out[:B, :USER_EMB_DIM]


# ----------------------------------------------------------------------------- reference
def _reference_forward(params, attr_id):
    """Pure-JAX reference matching the PyTorch Generator.forward."""
    B = attr_id.shape[0]
    attr_feat = jnp.take(params["emb"], attr_id, axis=0).reshape(B, FEAT_DIM)
    o1 = jnp.tanh(attr_feat @ params["w1"] + params["b1"])
    o2 = jnp.tanh(o1 @ params["w2"] + params["b2"])
    return jnp.tanh(o2 @ params["w3"] + params["b3"])


if __name__ == "__main__":
    key = jax.random.PRNGKey(0)
    pkey, ikey1, ikey2 = jax.random.split(key, 3)
    params = init_generator_params(pkey)
    kparams = prepare_generator_kernel_params(params)

    # Small batch: single grid step (tile clamps to 8).
    B1 = 8
    attr_id1 = jax.random.randint(ikey1, (B1, ATTR_NUM), 0, VOCAB, dtype=jnp.int32)
    out1 = jax.block_until_ready(generator_forward(kparams, attr_id1))
    ref1 = _reference_forward(params, attr_id1)
    assert out1.shape == (B1, USER_EMB_DIM)
    err1 = float(jnp.max(jnp.abs(out1 - ref1)))
    assert jnp.allclose(out1, ref1, atol=1e-4, rtol=1e-4), err1

    # Larger batch that is not a multiple of the tile: exercises the multi-step
    # batch grid (>=2 steps for megacore), minimal zero-padding and the output slice.
    B2 = 600
    attr_id2 = jax.random.randint(ikey2, (B2, ATTR_NUM), 0, VOCAB, dtype=jnp.int32)
    out2 = jax.block_until_ready(generator_forward(kparams, attr_id2))
    ref2 = _reference_forward(params, attr_id2)
    assert out2.shape == (B2, USER_EMB_DIM)
    err2 = float(jnp.max(jnp.abs(out2 - ref2)))
    assert jnp.allclose(out2, ref2, atol=1e-4, rtol=1e-4), err2

    print("KERNEL_OK")
</pallas_src>

<mosaic_0001>
module attributes {stable_mosaic.version = 11 : i64} {
  func.func @_generator_kernel(%arg0: i32, %arg1: memref<8x18xi32, #tpu.memory_space<vmem>>, %arg2: memref<18x768xbf16, #tpu.memory_space<vmem>>, %arg3: memref<1x768xf32, #tpu.memory_space<vmem>>, %arg4: memref<768x128xf32, #tpu.memory_space<vmem>>, %arg5: memref<128x128xf32, #tpu.memory_space<vmem>>, %arg6: memref<128x128xf32, #tpu.memory_space<vmem>>, %arg7: memref<2x128xf32, #tpu.memory_space<vmem>>, %arg8: memref<8x128xf32, #tpu.memory_space<vmem>>) attributes {dimension_semantics = [#tpu.dimension_semantics<parallel>], iteration_bounds = array<i64: 1>, scalar_prefetch = 0 : i64, scratch_operands = 0 : i64, tpu.core_type = #tpu.core_type<tc>, window_params = [{transform_indices = @transform_0, window_bounds = array<i64: 8, 18>}, {pipeline_mode = #tpu.pipeline_mode<synchronous>, transform_indices = @transform_1, window_bounds = array<i64: 18, 768>}, {pipeline_mode = #tpu.pipeline_mode<synchronous>, transform_indices = @transform_2, window_bounds = array<i64: 1, 768>}, {pipeline_mode = #tpu.pipeline_mode<synchronous>, transform_indices = @transform_3, window_bounds = array<i64: 768, 128>}, {pipeline_mode = #tpu.pipeline_mode<synchronous>, transform_indices = @transform_4, window_bounds = array<i64: 128, 128>}, {pipeline_mode = #tpu.pipeline_mode<synchronous>, transform_indices = @transform_5, window_bounds = array<i64: 128, 128>}, {pipeline_mode = #tpu.pipeline_mode<synchronous>, transform_indices = @transform_6, window_bounds = array<i64: 2, 128>}, {transform_indices = @transform_7, window_bounds = array<i64: 8, 128>}]} {
    %c0 = arith.constant 0 : index
    %c0_0 = arith.constant 0 : index
    %0 = vector.load %arg1[%c0, %c0_0] : memref<8x18xi32, #tpu.memory_space<vmem>>, vector<8x18xi32>
    %1 = arith.sitofp %0 : vector<8x18xi32> to vector<8x18xbf16>
    %c0_1 = arith.constant 0 : index
    %c0_2 = arith.constant 0 : index
    %2 = vector.load %arg2[%c0_1, %c0_2] : memref<18x768xbf16, #tpu.memory_space<vmem>>, vector<18x768xbf16>
    %cst = arith.constant dense<0.000000e+00> : vector<8x768xf32>
    %3 = tpu.matmul %1, %2, %cst {dimension_numbers = #tpu.dot_dimension_numbers<[1], [0], [0], [1], [0, 0, 1, 1], [], []>} : vector<8x18xbf16>, vector<18x768xbf16>, vector<8x768xf32> -> vector<8x768xf32>
    %c0_3 = arith.constant 0 : index
    %c0_4 = arith.constant 0 : index
    %4 = vector.load %arg3[%c0_3, %c0_4] : memref<1x768xf32, #tpu.memory_space<vmem>>, vector<1x768xf32>
    %5 = vector.broadcast %4 : vector<1x768xf32> to vector<8x768xf32>
    %6 = arith.cmpf oeq, %3, %5 : vector<8x768xf32>
    %7 = arith.extui %6 : vector<8x768xi1> to vector<8x768xi32>
    %8 = arith.sitofp %7 : vector<8x768xi32> to vector<8x768xf32>
    %c0_5 = arith.constant 0 : index
    %c0_6 = arith.constant 0 : index
    %9 = vector.load %arg4[%c0_5, %c0_6] : memref<768x128xf32, #tpu.memory_space<vmem>>, vector<768x128xf32>
    %cst_7 = arith.constant dense<0.000000e+00> : vector<8x128xf32>
    %10 = tpu.matmul %8, %9, %cst_7 {dimension_numbers = #tpu.dot_dimension_numbers<[1], [0], [0], [1], [0, 0, 1, 1], [], []>} : vector<8x768xf32>, vector<768x128xf32>, vector<8x128xf32> -> vector<8x128xf32>
    %11 = math.tanh %10 : vector<8x128xf32>
    %c0_8 = arith.constant 0 : index
    %c0_9 = arith.constant 0 : index
    %12 = vector.load %arg7[%c0_8, %c0_9] : memref<2x128xf32, #tpu.memory_space<vmem>>, vector<2x128xf32>
    %c0_10 = arith.constant 0 : index
    %c0_11 = arith.constant 0 : index
    %13 = vector.load %arg5[%c0_10, %c0_11] : memref<128x128xf32, #tpu.memory_space<vmem>>, vector<128x128xf32>
    %cst_12 = arith.constant dense<0.000000e+00> : vector<8x128xf32>
    %14 = tpu.matmul %11, %13, %cst_12 {dimension_numbers = #tpu.dot_dimension_numbers<[1], [0], [0], [1], [0, 0, 1, 1], [], []>} : vector<8x128xf32>, vector<128x128xf32>, vector<8x128xf32> -> vector<8x128xf32>
    %15 = vector.extract_strided_slice %12 {offsets = [0, 0], sizes = [1, 128], strides = [1, 1]} : vector<2x128xf32> to vector<1x128xf32>
    %16 = vector.broadcast %15 : vector<1x128xf32> to vector<8x128xf32>
    %17 = arith.addf %14, %16 : vector<8x128xf32>
    %18 = math.tanh %17 : vector<8x128xf32>
    %c0_13 = arith.constant 0 : index
    %c0_14 = arith.constant 0 : index
    %19 = vector.load %arg6[%c0_13, %c0_14] : memref<128x128xf32, #tpu.memory_space<vmem>>, vector<128x128xf32>
    %cst_15 = arith.constant dense<0.000000e+00> : vector<8x128xf32>
    %20 = tpu.matmul %18, %19, %cst_15 {dimension_numbers = #tpu.dot_dimension_numbers<[1], [0], [0], [1], [0, 0, 1, 1], [], []>} : vector<8x128xf32>, vector<128x128xf32>, vector<8x128xf32> -> vector<8x128xf32>
    %21 = vector.extract_strided_slice %12 {offsets = [1, 0], sizes = [1, 128], strides = [1, 1]} : vector<2x128xf32> to vector<1x128xf32>
    %22 = vector.broadcast %21 : vector<1x128xf32> to vector<8x128xf32>
    %23 = arith.addf %20, %22 : vector<8x128xf32>
    %24 = math.tanh %23 : vector<8x128xf32>
    %c0_16 = arith.constant 0 : index
    %c0_17 = arith.constant 0 : index
    %25 = vector.load %arg8[%c0_16, %c0_17] : memref<8x128xf32, #tpu.memory_space<vmem>>, vector<8x128xf32>
    tpu.vector_store %arg8[%c0_16, %c0_17], %24 {strides = array<i32>} : memref<8x128xf32, #tpu.memory_space<vmem>>, vector<8x128xf32>,
    return
  }
  func.func @transform_0(%arg0: i32) -> (i32, i32) {
    %c0_i32 = arith.constant 0 : i32
    %c0_i32_0 = arith.constant 0 : i32
    return %arg0, %c0_i32 : i32, i32
  }
  func.func @transform_1(%arg0: i32) -> (i32, i32) {
    %c0_i32 = arith.constant 0 : i32
    %c0_i32_0 = arith.constant 0 : i32
    %c0_i32_1 = arith.constant 0 : i32
    return %c0_i32, %c0_i32_0 : i32, i32
  }
  func.func @transform_2(%arg0: i32) -> (i32, i32) {
    %c0_i32 = arith.constant 0 : i32
    %c0_i32_0 = arith.constant 0 : i32
    %c0_i32_1 = arith.constant 0 : i32
    return %c0_i32, %c0_i32_0 : i32, i32
  }
  func.func @transform_3(%arg0: i32) -> (i32, i32) {
    %c0_i32 = arith.constant 0 : i32
    %c0_i32_0 = arith.constant 0 : i32
    %c0_i32_1 = arith.constant 0 : i32
    return %c0_i32, %c0_i32_0 : i32, i32
  }
  func.func @transform_4(%arg0: i32) -> (i32, i32) {
    %c0_i32 = arith.constant 0 : i32
    %c0_i32_0 = arith.constant 0 : i32
    %c0_i32_1 = arith.constant 0 : i32
    return %c0_i32, %c0_i32_0 : i32, i32
  }
  func.func @transform_5(%arg0: i32) -> (i32, i32) {
    %c0_i32 = arith.constant 0 : i32
    %c0_i32_0 = arith.constant 0 : i32
    %c0_i32_1 = arith.constant 0 : i32
    return %c0_i32, %c0_i32_0 : i32, i32
  }
  func.func @transform_6(%arg0: i32) -> (i32, i32) {
    %c0_i32 = arith.constant 0 : i32
    %c0_i32_0 = arith.constant 0 : i32
    %c0_i32_1 = arith.constant 0 : i32
    return %c0_i32, %c0_i32_0 : i32, i32
  }
  func.func @transform_7(%arg0: i32) -> (i32, i32) {
    %c0_i32 = arith.constant 0 : i32
    %c0_i32_0 = arith.constant 0 : i32
    return %arg0, %c0_i32 : i32, i32
  }
}

</mosaic_0001>

<bundles_post_ra>
// kernel: generator_forward.1
= control target key start
LH: loop header
LB: loop body
LE: loop exit
PB: predicated region body
PF: predicated region fallthrough
CT: control target
= control target key end

     0   :  { %12 = vsyncpa [#allocation3], 0  ;;  %s1619_s0 = inlined_call_operand.vmem [shape: s32[8,18], index: 0, kind: input, shape index: {}]   ;;  %s1620_s1 = inlined_call_operand.hbm [shape: bf16[18,768], index: 1, kind: input, shape index: {}]   ;;  %s1621_s2 = inlined_call_operand.vmem [shape: f32[1,768], index: 2, kind: input, shape index: {}]   ;;  %s1622_s3 = inlined_call_operand.hbm [shape: f32[768,128], index: 3, kind: input, shape index: {}]   ;;  %s1623_s4 = inlined_call_operand.hbm [shape: f32[128,128], index: 4, kind: input, shape index: {}]   ;;  %s1624_s5 = inlined_call_operand.hbm [shape: f32[128,128], index: 5, kind: input, shape index: {}]   ;;  %s1625_s6 = inlined_call_operand.hbm [shape: f32[2,128], index: 6, kind: input, shape index: {}]   ;;  %s1626_s7 = inlined_call_operand.hbm [shape: f32[8,128], index: 7, kind: output, shape index: {}]  }
   0x1   :  { %13 = vsyncpa [#allocation6], 0 }
   0x2   :  { %14 = vsyncpa [#allocation9], 0 }
   0x3   :  { %15 = vsyncpa [#allocation4], 0  ;;  %s1414_s24 = smov [#allocation5]   ;;  %s1274_s28 = scalar_lea.hbm %s1622_s3, 12288 }
   0x4   :  { %s37_s25 = sshll.u32 %s1414_s24, 4  ;;  %p1275_p0 = scmp.ne.s32.totalorder %s1622_s3, %s1274_s28  ;;  %s38_s25 = int_to_ptr.vmem [resolvable:$true] %s37_s25 }
   0x5   :  { %p1278_p1 = scmp.lt.u32.totalorder %s1274_s28, %s1622_s3 }
   0x7   :  { %p1280_p2 = pnand %p1278_p1, %p1275_p0 }
   0x9   :  { %1283 = shalt.err (!%p1280_p2)
}
   0xa   :  { %s1284_s10 = scalar_lea.vmem %s38_s25, 12288  ;;  %p1289_p4 = scmp.lt.s32.totalorder %s38_s25, %s38_s25 }
   0xb   :  { %p1285_p3 = scmp.ne.s32.totalorder %s38_s25, %s1284_s10  ;;  %p1290_p5 = scmp.lt.s32.totalorder %s1284_s10, %s1284_s10 }
   0xd   :  { %p1291_p6 = por %p1290_p5, %p1289_p4 }
   0xf   :  { %p1292_p7 = pnand %p1291_p6, %p1285_p3 }
  0x11   :  { %1295 = shalt.err (!%p1292_p7)
}
  0x12   :  { %s1415_s11 = smov 128   ;;  %s1416_s12 = smov 8  }
  0x13   :  { %43 = dma.hbm_to_vmem [thread:$0]  %s1622_s3, 12288, %s38_s25, [#allocation6], %s1415_s11, %s1415_s11, %s1416_s12  }
  0x14   :  { %s1417_s15 = smov [#allocation8]   ;;  %s1418_s17 = smov [#allocation2]  }
  0x15   :  { %s61_s16 = sshll.u32 %s1417_s15, 4  ;;  %s23_s18 = sshll.u32 %s1418_s17, 4  ;;  %s62_s16 = int_to_ptr.vmem [resolvable:$true] %s61_s16  ;;  %s24_s18 = int_to_ptr.vmem [resolvable:$true] %s23_s18 }
  0x16   :  { %s1296_s21 = scalar_lea.hbm %s1624_s5, 2048 }
  0x17   :  { %p1297_p8 = scmp.ne.s32.totalorder %s1624_s5, %s1296_s21  ;;  %p1300_p9 = scmp.lt.u32.totalorder %s1296_s21, %s1624_s5 }
  0x19   :  { %p1302_p10 = pnand %p1300_p9, %p1297_p8 }
  0x1b   :  { %1305 = shalt.err (!%p1302_p10)
}
  0x1c   :  { %s1306_s3 = scalar_lea.vmem %s62_s16, 2048  ;;  %p1311_p12 = scmp.lt.s32.totalorder %s62_s16, %s62_s16 }
  0x1d   :  { %p1307_p11 = scmp.ne.s32.totalorder %s62_s16, %s1306_s3  ;;  %p1312_p13 = scmp.lt.s32.totalorder %s1306_s3, %s1306_s3 }
  0x1f   :  { %p1313_p0 = por %p1312_p13, %p1311_p12 }
  0x21   :  { %p1314_p1 = pnand %p1313_p0, %p1307_p11 }
  0x23   :  { %1317 = shalt.err (!%p1314_p1)
}
  0x24   :  { %67 = dma.hbm_to_vmem [thread:$0]  %s1624_s5, 2048, %s62_s16, [#allocation9], %s1415_s11, %s1415_s11, %s1416_s12  }
  0x25   :  { %s1318_s30 = scalar_lea.hbm %s1620_s1, 1152 }
  0x26   :  { %p1319_p2 = scmp.ne.s32.totalorder %s1620_s1, %s1318_s30  ;;  %p1322_p3 = scmp.lt.u32.totalorder %s1318_s30, %s1620_s1 }
  0x28   :  { %p1324_p4 = pnand %p1322_p3, %p1319_p2 }
  0x2a   :  { %1327 = shalt.err (!%p1324_p4)
}
  0x2b   :  { %s1328_s14 = scalar_lea.vmem %s24_s18, 1152  ;;  %p1333_p6 = scmp.lt.s32.totalorder %s24_s18, %s24_s18 }
  0x2c   :  { %p1329_p5 = scmp.ne.s32.totalorder %s24_s18, %s1328_s14  ;;  %p1334_p7 = scmp.lt.s32.totalorder %s1328_s14, %s1328_s14 }
  0x2e   :  { %p1335_p8 = por %p1334_p7, %p1333_p6 }
  0x30   :  { %p1336_p9 = pnand %p1335_p8, %p1329_p5 }
  0x32   :  { %1339 = shalt.err (!%p1336_p9)
}
  0x33   :  { %s1419_s5 = smov 384   ;;  %s1420_s15 = smov 24  }
  0x34   :  { %29 = dma.hbm_to_vmem [thread:$0]  %s1620_s1, 1152, %s24_s18, [#allocation3], %s1419_s5, %s1419_s5, %s1420_s15  }
  0x35   :  { %s1421_s19 = smov [#allocation7]   ;;  %s1422_s21 = smov [#allocation10]  }
  0x36   :  { %s49_s20 = sshll.u32 %s1421_s19, 4  ;;  %s74_s22 = sshll.u32 %s1422_s21, 4  ;;  %s50_s20 = int_to_ptr.vmem [resolvable:$true] %s49_s20  ;;  %s75_s22 = int_to_ptr.vmem [resolvable:$true] %s74_s22 }
  0x37   :  { %s1340_s26 = scalar_lea.hbm %s1623_s4, 2048 }
  0x38   :  { %p1341_p10 = scmp.ne.s32.totalorder %s1623_s4, %s1340_s26  ;;  %p1344_p11 = scmp.lt.u32.totalorder %s1340_s26, %s1623_s4 }
  0x3a   :  { %p1346_p12 = pnand %p1344_p11, %p1341_p10 }
  0x3c   :  { %1349 = shalt.err (!%p1346_p12)
}
  0x3d   :  { %s1350_s1 = scalar_lea.vmem %s50_s20, 2048  ;;  %p1355_p0 = scmp.lt.s32.totalorder %s50_s20, %s50_s20 }
  0x3e   :  { %p1351_p13 = scmp.ne.s32.totalorder %s50_s20, %s1350_s1  ;;  %p1356_p1 = scmp.lt.s32.totalorder %s1350_s1, %s1350_s1 }
  0x40   :  { %p1357_p2 = por %p1356_p1, %p1355_p0 }
  0x42   :  { %p1358_p3 = pnand %p1357_p2, %p1351_p13 }
  0x44   :  { %1361 = shalt.err (!%p1358_p3)
}
  0x45   :  { %55 = dma.hbm_to_vmem [thread:$0]  %s1623_s4, 2048, %s50_s20, [#allocation6], %s1415_s11, %s1415_s11, %s1416_s12  }
  0x46   :  { %s1362_s9 = scalar_lea.hbm %s1625_s6, 32 }
  0x47   :  { %p1363_p4 = scmp.ne.s32.totalorder %s1625_s6, %s1362_s9  ;;  %p1366_p5 = scmp.lt.u32.totalorder %s1362_s9, %s1625_s6 }
  0x49   :  { %p1368_p6 = pnand %p1366_p5, %p1363_p4 }
  0x4b   :  { %1371 = shalt.err (!%p1368_p6)
}
  0x4c   :  { %s1372_s15 = scalar_lea.vmem %s75_s22, 32  ;;  %p1377_p8 = scmp.lt.s32.totalorder %s75_s22, %s75_s22 }
  0x4d   :  { %p1373_p7 = scmp.ne.s32.totalorder %s75_s22, %s1372_s15  ;;  %p1378_p9 = scmp.lt.s32.totalorder %s1372_s15, %s1372_s15 }
  0x4f   :  { %p1379_p10 = por %p1378_p9, %p1377_p8 }
  0x51   :  { %p1380_p11 = pnand %p1379_p10, %p1373_p7 }
  0x53   :  { %1383 = shalt.err (!%p1380_p11)
}
  0x54   :  { %77 = dma.hbm_to_vmem [thread:$0]  %s1625_s6, 32, %s75_s22, [#allocation9]  }
  0x55   :  { %1406 = dma.done.wait [#allocation3], 1152  }
  0x56   :  { %1407 = vsyncadd [#allocation3], 4294966144 }
  0x57   :  { %1408 = dma.done.wait [#allocation6], 14336  }
  0x58   :  { %1409 = vsyncadd [#allocation6], 4294952960 }
  0x59   :  { %1410 = dma.done.wait [#allocation9], 2080  }
  0x5a   :  { %1411 = vsyncadd [#allocation9], 4294965216  ;;  %v1423_v0 = vmov 0   ;;  %v1253_v1 = vld [vmem:[#allocation2 + $0x4] ss:$24 sps:$4 sm:$0xff]   ;;  %vm155_vm0 = vcmask 1040384  }
  0x5b   :  { %206 = vmatprep.mubr.bf16.mxu0 %v1423_v0  ;;  %v1255_v2 = vld [vmem:[#allocation2] ss:$24 sps:$4 sm:$0xff]   ;;  %v103_v3 = vld [vmem:[#allocation2 + $0x30] sm:$0x11]  ;;  %174 = vmatprep.subr.bf16.mxu0 %v1253_v1  ;;  %v1260_v9 = vld [vmem:[#allocation2 + $0xc] ss:$24 sps:$4 sm:$0xff]  }
  0x5c   :  { %v94_v4 = vld [vmem:[%s1619_s0] sm:$0xff]  ;;  %v862_v5 = vcombine.high %v103_v3, %v103_v3  ;;  %v861_v6 = vcombine.low %v103_v3, %v103_v3  ;;  %175 = vmatpush1.bf16.msra.mxu0 %v1255_v2  ;;  %v1258_v10 = vld [vmem:[#allocation2 + $0x8] ss:$24 sps:$4 sm:$0xff]   ;;  %v104_v11 = vld [vmem:[#allocation2 + $0x38] sm:$0x11]  ;;  %vm151_vm1 = vcmask 146432  }
  0x5d   :  { %v95_v7 = vcvt.s32.f32 %v94_v4  ;;  %v363_v12 = vld [vmem:[#allocation5 + $0x80] sm:$0xff]  ;;  %v364_v13 = vld [vmem:[#allocation5 + $0x88] sm:$0xff]  ;;  %v365_v18 = vld [vmem:[#allocation5 + $0x90] sm:$0xff]  ;;  %v864_v23 = vcombine.high %v104_v11, %v104_v11  ;;  %v863_v24 = vcombine.low %v104_v11, %v104_v11  ;;  %vm1426_vm8 = vmmov 0  }
  0x5e   :  { %867 = vmatprep.subr.msk.bf16.mxu0 %vm155_vm0, %v862_v5  ;;  %v157_v8 = vsel %vm155_vm0, %v861_v6, 0  ;;  %v1094_v15 = vpack.c.bf16 %v364_v13, %v363_v12  ;;  %v347_v16 = vld [vmem:[#allocation5] sm:$0xff]  ;;  %v348_v17 = vld [vmem:[#allocation5 + $0x8] sm:$0xff]  ;;  %v366_v20 = vld [vmem:[#allocation5 + $0x98] sm:$0xff] }
  0x5f   :  { %v1544_v14 = vpack.c.bf16 %v95_v7, %v95_v7  ;;  %v1096_v19 = vpack.c.bf16 %v348_v17, %v347_v16  ;;  %v349_v21 = vld [vmem:[#allocation5 + $0x10] sm:$0xff]  ;;  %v350_v22 = vld [vmem:[#allocation5 + $0x18] sm:$0xff]  ;;  %v1098_v25 = vpack.c.bf16 %v366_v20, %v365_v18  ;;  %v367_v26 = vld [vmem:[#allocation5 + $0xa0] sm:$0xff]  ;;  %v163_v34 = vsel %vm155_vm0, %v863_v24, 0 }
  0x60   :  { %177 = vmatpush1.bf16.msra.mxu0 %v157_v8  ;;  %1095 = vmatprep.subr.bf16.mxu1 %v1094_v15  ;;  %v368_v27 = vld [vmem:[#allocation5 + $0xa8] sm:$0xff]  ;;  %v1100_v28 = vpack.c.bf16 %v350_v22, %v349_v21  ;;  %v351_v30 = vld [vmem:[#allocation5 + $0x20] sm:$0xff]  ;;  %v369_v32 = vld [vmem:[#allocation5 + $0xb0] sm:$0xff] }
  0x61   :  { %215 = vmatprep.subr.bf16.mxu0 %v1260_v9  ;;  %1097 = vmatpush3.bf16.msra.mxu1 %v1096_v19  ;;  %v1102_v29 = vpack.c.bf16 %v368_v27, %v367_v26  ;;  %v352_v31 = vld [vmem:[#allocation5 + $0x28] sm:$0xff]  ;;  %v370_v33 = vld [vmem:[#allocation5 + $0xb8] sm:$0xff]  ;;  %v353_v39 = vld [vmem:[#allocation5 + $0x30] sm:$0xff] }
  0x62   :  { %1099 = vmatprep.subr.bf16.mxu1 %v1098_v25  ;;  %v1265_v35 = vld [vmem:[#allocation2 + $0x14] ss:$24 sps:$4 sm:$0xff]   ;;  %v105_v36 = vld [vmem:[#allocation2 + $0x40] sm:$0x11]  ;;  %v1104_v37 = vpack.c.bf16 %v352_v31, %v351_v30  ;;  %v1106_v38 = vpack.c.bf16 %v370_v33, %v369_v32  ;;  %v1263_v41 = vld [vmem:[#allocation2 + $0x10] ss:$24 sps:$4 sm:$0xff]  }
  0x63   :  { %868 = vmatmul.mubr.msk.bf16.vlgmr.msra.gmra.mrb[0].mxu0 %vm151_vm1, %v1544_v14  ;;  %v354_v40 = vld [vmem:[#allocation5 + $0x38] sm:$0xff]  ;;  %v371_v42 = vld [vmem:[#allocation5 + $0xc0] sm:$0xff]  ;;  %v372_v43 = vld [vmem:[#allocation5 + $0xc8] sm:$0xff]  ;;  %v866_v44 = vcombine.high %v105_v36, %v105_v36  ;;  %v865_v45 = vcombine.low %v105_v36, %v105_v36 }
  0x64   :  { %216 = vmatpush1.bf16.msra.mxu0 %v1258_v10  ;;  %247 = vmatprep.mubr.bf16.mxu0 %v1423_v0  ;;  %v395_v46 = vld [vmem:[#allocation5 + $0x180] sm:$0xff]  ;;  %v396_v47 = vld [vmem:[#allocation5 + $0x188] sm:$0xff]  ;;  %v1108_v48 = vpack.c.bf16 %v354_v40, %v353_v39  ;;  %v1110_v49 = vpack.c.bf16 %v372_v43, %v371_v42  ;;  %v373_v52 = vld [vmem:[#allocation5 + $0xd0] sm:$0xff] }
  0x65   :  { %869 = vmatprep.subr.msk.bf16.mxu0 %vm155_vm0, %v864_v23  ;;  %1101 = vmatpush3.bf16.msra.mxu1 %v1100_v28  ;;  %v355_v50 = vld [vmem:[#allocation5 + $0x40] sm:$0xff]  ;;  %v356_v51 = vld [vmem:[#allocation5 + $0x48] sm:$0xff]  ;;  %v374_v53 = vld [vmem:[#allocation5 + $0xd8] sm:$0xff]  ;;  %v169_v54 = vsel %vm155_vm0, %v865_v45, 0  ;;  %v1126_v55 = vpack.c.bf16 %v396_v47, %v395_v46 }
  0x66   :  { %1103 = vmatprep.subr.bf16.mxu1 %v1102_v29  ;;  %v379_v56 = vld [vmem:[#allocation5 + $0x100] sm:$0xff]  ;;  %v380_v57 = vld [vmem:[#allocation5 + $0x108] sm:$0xff]  ;;  %v397_v58 = vld [vmem:[#allocation5 + $0x190] sm:$0xff]  ;;  %v1112_v60 = vpack.c.bf16 %v356_v51, %v355_v50  ;;  %v1114_v61 = vpack.c.bf16 %v374_v53, %v373_v52 }
  0x67   :  { %v398_v59 = vld [vmem:[#allocation5 + $0x198] sm:$0xff]  ;;  %v357_v62 = vld [vmem:[#allocation5 + $0x50] sm:$0xff]  ;;  %v1128_v1 = vpack.c.bf16 %v380_v57, %v379_v56  ;;  %v376_v2 = vld [vmem:[#allocation5 + $0xe8] sm:$0xff]  ;;  %v299_v57 = vlaneseq }
  0x68   :  { %218 = vmatpush1.bf16.msra.mxu0 %v163_v34  ;;  %v358_v63 = vld [vmem:[#allocation5 + $0x58] sm:$0xff]  ;;  %v1130_v3 = vpack.c.bf16 %v398_v59, %v397_v58  ;;  %v381_v4 = vld [vmem:[#allocation5 + $0x110] sm:$0xff]  ;;  %v399_v6 = vld [vmem:[#allocation5 + $0x1a0] sm:$0xff] }
  0x69   :  { %256 = vmatprep.subr.bf16.mxu0 %v1265_v35  ;;  %1105 = vmatpush3.bf16.msra.mxu1 %v1104_v37  ;;  %v382_v5 = vld [vmem:[#allocation5 + $0x118] sm:$0xff]  ;;  %v400_v7 = vld [vmem:[#allocation5 + $0x1a8] sm:$0xff]  ;;  %v1116_v8 = vpack.c.bf16 %v358_v63, %v357_v62  ;;  %v359_v10 = vld [vmem:[#allocation5 + $0x60] sm:$0xff]  ;;  %v1558_v58 = vshrl.u32 %v299_v57, 7 }
  0x6a   :  { %1107 = vmatprep.subr.bf16.mxu1 %v1106_v38  ;;  %v360_v11 = vld [vmem:[#allocation5 + $0x68] sm:$0xff]  ;;  %v1132_v12 = vpack.c.bf16 %v382_v5, %v381_v4  ;;  %v377_v13 = vld [vmem:[#allocation5 + $0xf0] sm:$0xff]  ;;  %v378_v15 = vld [vmem:[#allocation5 + $0xf8] sm:$0xff]  ;;  %v1134_v16 = vpack.c.bf16 %v400_v7, %v399_v6 }
  0x6b   :  { %870 = vmatmul.mubr.msk.bf16.vlgmr.msra.gmra.mrb[4].mxu0 %vm151_vm1, %v1544_v14  ;;  %v383_v17 = vld [vmem:[#allocation5 + $0x120] sm:$0xff]  ;;  %v384_v18 = vld [vmem:[#allocation5 + $0x128] sm:$0xff]  ;;  %v401_v19 = vld [vmem:[#allocation5 + $0x1b0] sm:$0xff]  ;;  %v1120_v21 = vpack.c.bf16 %v360_v11, %v359_v10  ;;  %v1122_v22 = vpack.c.bf16 %v378_v15, %v377_v13  ;;  %v305_v59 = vsub.s32 1, %v1558_v58  ;;  %v309_v7 = vsub.s32 2, %v1558_v58 }
  0x6c   :  { %257 = vmatpush1.bf16.msra.mxu0 %v1263_v41  ;;  %288 = vmatprep.mubr.bf16.mxu0 %v1423_v0  ;;  %v375_v0 = vld [vmem:[#allocation5 + $0xe0] sm:$0xff]  ;;  %v402_v20 = vld [vmem:[#allocation5 + $0x1b8] sm:$0xff]  ;;  %v385_v24 = vld [vmem:[#allocation5 + $0x130] sm:$0xff]  ;;  %v1424_v15 = vmov 1.0  }
  0x6d   :  { %871 = vmatprep.subr.msk.bf16.mxu0 %vm155_vm0, %v866_v44  ;;  %1109 = vmatpush3.bf16.msra.mxu1 %v1108_v48  ;;  %v1118_v9 = vpack.c.bf16 %v376_v2, %v375_v0  ;;  %v1138_v23 = vpack.c.bf16 %v402_v20, %v401_v19  ;;  %v386_v25 = vld [vmem:[#allocation5 + $0x138] sm:$0xff]  ;;  %v403_v26 = vld [vmem:[#allocation5 + $0x1c0] sm:$0xff]  ;;  %v404_v27 = vld [vmem:[#allocation5 + $0x1c8] sm:$0xff] }
  0x6e   :  { %1111 = vmatprep.subr.bf16.mxu1 %v1110_v49  ;;  %v1140_v28 = vpack.c.bf16 %v386_v25, %v385_v24  ;;  %v1142_v29 = vpack.c.bf16 %v404_v27, %v403_v26  ;;  %v387_v30 = vld [vmem:[#allocation5 + $0x140] sm:$0xff]  ;;  %v388_v31 = vld [vmem:[#allocation5 + $0x148] sm:$0xff]  ;;  %v361_v33 = vld [vmem:[#allocation5 + $0x70] sm:$0xff] }
  0x6f   :  { %v1144_v32 = vpack.c.bf16 %v388_v31, %v387_v30  ;;  %v362_v34 = vld [vmem:[#allocation5 + $0x78] sm:$0xff]  ;;  %v405_v35 = vld [vmem:[#allocation5 + $0x1d0] sm:$0xff]  ;;  %v427_v42 = vld [vmem:[#allocation5 + $0x280] sm:$0xff] }
  0x70   :  { %259 = vmatpush1.bf16.msra.mxu0 %v169_v54  ;;  %v1124_v36 = vpack.c.bf16 %v362_v34, %v361_v33  ;;  %v406_v37 = vld [vmem:[#allocation5 + $0x1d8] sm:$0xff]  ;;  %v389_v38 = vld [vmem:[#allocation5 + $0x150] sm:$0xff]  ;;  %v428_v43 = vld [vmem:[#allocation5 + $0x288] sm:$0xff] }
  0x71   :  { %1127 = vmatprep.subr.bf16.mxu0 %v1126_v55  ;;  %1113 = vmatpush3.bf16.msra.mxu1 %v1112_v60  ;;  %v1146_v39 = vpack.c.bf16 %v406_v37, %v405_v35  ;;  %v390_v40 = vld [vmem:[#allocation5 + $0x158] sm:$0xff]  ;;  %v1158_v44 = vpack.c.bf16 %v428_v43, %v427_v42  ;;  %v407_v45 = vld [vmem:[#allocation5 + $0x1e0] sm:$0xff]  ;;  %v408_v46 = vld [vmem:[#allocation5 + $0x1e8] sm:$0xff] }
  0x72   :  { %1115 = vmatprep.subr.bf16.mxu1 %v1114_v61  ;;  %v1148_v41 = vpack.c.bf16 %v390_v40, %v389_v38  ;;  %v1150_v47 = vpack.c.bf16 %v408_v46, %v407_v45  ;;  %v391_v48 = vld [vmem:[#allocation5 + $0x160] sm:$0xff]  ;;  %v392_v49 = vld [vmem:[#allocation5 + $0x168] sm:$0xff]  ;;  %v409_v51 = vld [vmem:[#allocation5 + $0x1f0] sm:$0xff]  ;;  %v301_v61 = vsub.s32 0, %v1558_v58 }
  0x73   :  { %872 = vmatmul.mubr.msk.bf16.vlgmr.msra.gmra.mrb[8].mxu0 %vm151_vm1, %v1544_v14  ;;  %v1136_v14 = vpack.c.bf16 %v384_v18, %v383_v17  ;;  %v1152_v50 = vpack.c.bf16 %v392_v49, %v391_v48  ;;  %v410_v52 = vld [vmem:[#allocation5 + $0x1f8] sm:$0xff]  ;;  %v393_v54 = vld [vmem:[#allocation5 + $0x170] sm:$0xff]  ;;  %v1564_v60 = vld [vmem:[%s1621_s2] sm:$0x3f]  ;;  %s1428_s2 = smov [#allocation11]  }
  0x74   :  { %1129 = vmatpush3.bf16.msra.mxu0 %v1128_v1  ;;  %v1154_v53 = vpack.c.bf16 %v410_v52, %v409_v51  ;;  %v394_v55 = vld [vmem:[#allocation5 + $0x178] sm:$0xff]  ;;  %v306_v62 = vrot.slane %v1564_v60, %v305_v59  ;;  %v411_v63 = vld [vmem:[#allocation5 + $0x200] sm:$0xff]  ;;  %v412_v1 = vld [vmem:[#allocation5 + $0x208] sm:$0xff]  ;;  %v302_v0 = vrot.slane %v1564_v60, %v301_v61  ;;  %v310_v18 = vrot.slane %v1564_v60, %v309_v7  ;;  %s844_s17 = sshll.u32 %s1428_s2, 4  ;;  %s845_s17 = int_to_ptr.vmem [resolvable:$true] %s844_s17 }
  0x75   :  { %1131 = vmatprep.subr.bf16.mxu0 %v1130_v3  ;;  %1117 = vmatpush3.bf16.msra.mxu1 %v1116_v8  ;;  %v1156_v56 = vpack.c.bf16 %v394_v55, %v393_v54  ;;  %v429_v2 = vld [vmem:[#allocation5 + $0x290] sm:$0xff]  ;;  %v430_v3 = vld [vmem:[#allocation5 + $0x298] sm:$0xff]  ;;  %v1160_v6 = vpack.c.bf16 %v412_v1, %v411_v63  ;;  %v432_v17 = vld [vmem:[#allocation5 + $0x2a8] sm:$0xff]  ;;  %s1384_s19 = scalar_lea.vmem %s845_s17, 128  ;;  %p1389_p13 = scmp.lt.s32.totalorder %s845_s17, %s845_s17 }
  0x76   :  { %1119 = vmatprep.subr.bf16.mxu1 %v1118_v9  ;;  %v1162_v9 = vpack.c.bf16 %v430_v3, %v429_v2  ;;  %v413_v10 = vld [vmem:[#allocation5 + $0x210] sm:$0xff]  ;;  %v414_v11 = vld [vmem:[#allocation5 + $0x218] sm:$0xff]  ;;  %v435_v33 = vld [vmem:[#allocation5 + $0x2c0] sm:$0xff]  ;;  %v317_v3 = vsub.s32 4, %v1558_v58  ;;  %p1385_p12 = scmp.ne.s32.totalorder %s845_s17, %s1384_s19  ;;  %p1390_p0 = scmp.lt.s32.totalorder %s1384_s19, %s1384_s19 }
  0x77   :  { %v1164_v19 = vpack.c.bf16 %v414_v11, %v413_v10  ;;  %v434_v24 = vld [vmem:[#allocation5 + $0x2b8] sm:$0xff]  ;;  %v436_v34 = vld [vmem:[#allocation5 + $0x2c8] sm:$0xff]  ;;  %v419_v38 = vld [vmem:[#allocation5 + $0x240] sm:$0xff] }
  0x78   :  { %1133 = vmatpush3.bf16.msra.mxu0 %v1132_v12  ;;  %v313_v12 = vsub.s32 3, %v1558_v58  ;;  %v418_v30 = vld [vmem:[#allocation5 + $0x238] sm:$0xff]  ;;  %v1174_v37 = vpack.c.bf16 %v436_v34, %v435_v33  ;;  %v440_v51 = vld [vmem:[#allocation5 + $0x2e8] sm:$0xff]  ;;  %v423_v55 = vld [vmem:[#allocation5 + $0x260] sm:$0xff]  ;;  %p1391_p1 = por %p1390_p0, %p1389_p13 }
  0x79   :  { %1135 = vmatprep.subr.bf16.mxu0 %v1134_v16  ;;  %1121 = vmatpush3.bf16.msra.mxu1 %v1120_v21  ;;  %v431_v16 = vld [vmem:[#allocation5 + $0x2a0] sm:$0xff]  ;;  %v438_v42 = vld [vmem:[#allocation5 + $0x2d8] sm:$0xff]  ;;  %v441_v57 = vld [vmem:[#allocation5 + $0x2f0] sm:$0xff] }
  0x7a   :  { %1123 = vmatprep.subr.bf16.mxu1 %v1122_v22  ;;  %v314_v20 = vrot.slane %v1564_v60, %v313_v12  ;;  %v1166_v21 = vpack.c.bf16 %v432_v17, %v431_v16  ;;  %v415_v22 = vld [vmem:[#allocation5 + $0x220] sm:$0xff]  ;;  %v422_v48 = vld [vmem:[#allocation5 + $0x258] sm:$0xff]  ;;  %v656_v7 = vld [vmem:[#allocation7 + $0x8] sm:$0xff]  ;;  %p1392_p2 = pnand %p1391_p1, %p1385_p12 }
  0x7b   :  { %v426_v2 = vld [vmem:[#allocation5 + $0x278] sm:$0xff]  ;;  %v748_v33 = vld [vmem:[#allocation8 + $0x10] sm:$0xff] }
  0x7c   :  { %1137 = vmatpush3.bf16.msra.mxu0 %v1136_v14  ;;  %v416_v14 = vld [vmem:[#allocation5 + $0x228] sm:$0xff]  ;;  %v658_v11 = vld [vmem:[#allocation7 + $0x18] sm:$0xff] }
  0x7d   :  { %1139 = vmatprep.subr.bf16.mxu0 %v1138_v23  ;;  %1125 = vmatpush3.bf16.msra.mxu1 %v1124_v36  ;;  %v433_v23 = vld [vmem:[#allocation5 + $0x2b0] sm:$0xff]  ;;  %v1168_v27 = vpack.c.bf16 %v416_v14, %v415_v22  ;;  %v662_v17 = vld [vmem:[#allocation7 + $0x38] sm:$0xff] }
  0x7e   :  { %1159 = vmatprep.subr.bf16.mxu1 %v1158_v44  ;;  %v665_v22 = vld [vmem:[#allocation7 + $0x50] sm:$0xff]  ;;  %v666_v14 = vld [vmem:[#allocation7 + $0x58] sm:$0xff] }
  0x80   :  { %1141 = vmatpush3.bf16.msra.mxu0 %v1140_v28  ;;  %v1170_v28 = vpack.c.bf16 %v434_v24, %v433_v23  ;;  %v1206_v23 = vpack.c.bf16 %v666_v14, %v665_v22  ;;  %v667_v24 = vld [vmem:[#allocation7 + $0x60] sm:$0xff] }
  0x81   :  { %1143 = vmatprep.subr.bf16.mxu0 %v1142_v29  ;;  %v417_v29 = vld [vmem:[#allocation5 + $0x230] sm:$0xff] }
  0x82   :  { %v1172_v36 = vpack.c.bf16 %v418_v30, %v417_v29  ;;  %v1427_v29 = vmov 0.0  }
  0x84   :  { %1145 = vmatpush3.bf16.msra.mxu0 %v1144_v32  ;;  %v321_v32 = vsub.s32 5, %v1558_v58 }
  0x85   :  { %1147 = vmatprep.subr.bf16.mxu0 %v1146_v39  ;;  %v420_v39 = vld [vmem:[#allocation5 + $0x248] sm:$0xff] }
  0x86   :  { %v322_v40 = vrot.slane %v1564_v60, %v321_v32  ;;  %v1176_v44 = vpack.c.bf16 %v420_v39, %v419_v38  ;;  %v747_v32 = vld [vmem:[#allocation8 + $0x8] sm:$0xff] }
  0x87   :  { %v751_v38 = vld [vmem:[#allocation8 + $0x28] sm:$0xff] }
  0x88   :  { %1149 = vmatpush3.bf16.msra.mxu0 %v1148_v41  ;;  %v437_v41 = vld [vmem:[#allocation5 + $0x2d0] sm:$0xff] }
  0x89   :  { %1151 = vmatprep.subr.bf16.mxu0 %v1150_v47  ;;  %v1178_v46 = vpack.c.bf16 %v438_v42, %v437_v41  ;;  %v421_v47 = vld [vmem:[#allocation5 + $0x250] sm:$0xff]  ;;  %v753_v41 = vld [vmem:[#allocation8 + $0x38] sm:$0xff] }
  0x8c   :  { %1153 = vmatpush3.bf16.msra.mxu0 %v1152_v50  ;;  %v439_v50 = vld [vmem:[#allocation5 + $0x2e0] sm:$0xff] }
  0x8d   :  { %1155 = vmatprep.subr.bf16.mxu0 %v1154_v53  ;;  %v1180_v53 = vpack.c.bf16 %v422_v48, %v421_v47  ;;  %v1182_v54 = vpack.c.bf16 %v440_v51, %v439_v50 }
  0x90   :  { %1157 = vmatpush3.bf16.msra.mxu0 %v1156_v56  ;;  %v424_v56 = vld [vmem:[#allocation5 + $0x268] sm:$0xff] }
  0x91   :  { %v1184_v63 = vpack.c.bf16 %v424_v56, %v423_v55 }
 0x136   :  { %v208_v4 = vpop.f32.mrb[0].mxu0 }
 0x137   :  { %v210_v5 = vpop.f32.mrb[1].mxu0  ;;  %vm329_vm3 = vcmp.eq.f32.partialorder %v208_v4, %v302_v0  ;;  %v425_v0 = vld [vmem:[#allocation5 + $0x270] sm:$0xff] }
 0x138   :  { %v212_v8 = vpop.f32.mrb[2].mxu0  ;;  %vm330_vm2 = vcmp.eq.f32.partialorder %v210_v5, %v306_v62  ;;  %v442_v62 = vld [vmem:[#allocation5 + $0x2f8] sm:$0xff]  ;;  %v1188_v4 = vpack.c.bf16 %v426_v2, %v425_v0  ;;  %v318_v5 = vrot.slane %v1564_v60, %v317_v3  ;;  %v660_v60 = vld [vmem:[#allocation7 + $0x28] sm:$0xff]  ;;  %v758_v0 = vld [vmem:[#allocation8 + $0x60] sm:$0xff] }
 0x139   :  { %v213_v13 = vpop.f32.mrb[3].mxu0  ;;  %879 = vmatprep.mubr.msk.f32.mxu1 %vm330_vm2, %v1424_v15  ;;  %v1186_v1 = vpack.c.bf16 %v442_v62, %v441_v57  ;;  %v657_v8 = vld [vmem:[#allocation7 + $0x10] sm:$0xff]  ;;  %v759_v2 = vld [vmem:[#allocation8 + $0x68] sm:$0xff] }
 0x13a   :  { %880 = vmatmul.mubr.msk.f32.vlgmr.msra.gmra.mrb[0].mxu1 %vm329_vm3, %v1424_v15  ;;  %v1194_v12 = vpack.c.bf16 %v658_v11, %v657_v8  ;;  %v659_v13 = vld [vmem:[#allocation7 + $0x20] sm:$0xff]  ;;  %v756_v62 = vld [vmem:[#allocation8 + $0x50] sm:$0xff]  ;;  %v1233_v3 = vpack.c.bf16 %v759_v2, %v758_v0 }
 0x13b   :  { %1161 = vmatpush3.bf16.msra.mxu1 %v1160_v6  ;;  %v655_v6 = vld [vmem:[#allocation7] sm:$0xff]  ;;  %v1197_v16 = vpack.c.bf16 %v660_v60, %v659_v13 }
 0x13c   :  { %1163 = vmatprep.subr.bf16.mxu1 %v1162_v9  ;;  %v1425_v9 = vmov 0.0|0.0   ;;  %v1191_v10 = vpack.c.bf16 %v656_v7, %v655_v6  ;;  %v654_v7 = vld [vmem:[#allocation10] sm:$0x3] }
 0x13d   :  { %1190 = vmatprep.subr.bf16.mxu0 %v1425_v9  ;;  %v674_v8 = vrot.slane %v654_v7, %v301_v61  ;;  %v765_v60 = vrot.slane %v654_v7, %v305_v59 }
 0x13e   :  { %v249_v25 = vpop.f32.mrb[4].mxu0 }
 0x13f   :  { %vm331_vm4 = vcmp.eq.f32.partialorder %v249_v25, %v310_v18  ;;  %1165 = vmatpush3.bf16.msra.mxu1 %v1164_v19  ;;  %v251_v26 = vpop.f32.mrb[5].mxu0  ;;  %v663_v19 = vld [vmem:[#allocation7 + $0x40] sm:$0xff]  ;;  %v668_v25 = vld [vmem:[#allocation7 + $0x68] sm:$0xff] }
 0x140   :  { %vm332_vm5 = vcmp.eq.f32.partialorder %v251_v26, %v314_v20  ;;  %1167 = vmatprep.subr.bf16.mxu1 %v1166_v21  ;;  %v253_v31 = vpop.f32.mrb[6].mxu0  ;;  %v664_v20 = vld [vmem:[#allocation7 + $0x48] sm:$0xff]  ;;  %v1209_v26 = vpack.c.bf16 %v668_v25, %v667_v24 }
 0x141   :  { %881 = vmatprep.mubr.msk.f32.mxu0 %vm332_vm5, %v1424_v15  ;;  %v254_v35 = vpop.f32.mrb[7].mxu0  ;;  %v1203_v21 = vpack.c.bf16 %v664_v20, %v663_v19  ;;  %v746_v31 = vld [vmem:[#allocation8] sm:$0xff] }
 0x142   :  { %882 = vmatmul.mubr.msk.f32.vlgmr.msra.gmra.mrb[12].mxu0 %vm331_vm4, %v1424_v15  ;;  %v1215_v34 = vpack.c.bf16 %v747_v32, %v746_v31  ;;  %v749_v35 = vld [vmem:[#allocation8 + $0x18] sm:$0xff] }
 0x143   :  { %1169 = vmatpush3.bf16.msra.mxu1 %v1168_v27  ;;  %1192 = vmatpush3.bf16.msra.mxu0 %v1191_v10  ;;  %v669_v27 = vld [vmem:[#allocation7 + $0x70] sm:$0xff] }
 0x144   :  { %1171 = vmatprep.subr.bf16.mxu1 %v1170_v28  ;;  %1193 = vmatprep.subr.bf16.mxu0 %v1425_v9  ;;  %v670_v28 = vld [vmem:[#allocation7 + $0x78] sm:$0xff] }
 0x145   :  { %1056 = vmatprep.mubr.msk.f32.mxu0 %vm1426_vm8, %v1427_v29  ;;  %v1212_v30 = vpack.c.bf16 %v670_v28, %v669_v27 }
 0x146   :  { %v290_v43 = vpop.f32.mrb[8].mxu0 }
 0x147   :  { %1173 = vmatpush3.bf16.msra.mxu1 %v1172_v36  ;;  %v292_v45 = vpop.f32.mrb[9].mxu0  ;;  %vm333_vm7 = vcmp.eq.f32.partialorder %v290_v43, %v318_v5  ;;  %1195 = vmatpush3.bf16.msra.mxu0 %v1194_v12  ;;  %v1218_v36 = vpack.c.bf16 %v749_v35, %v748_v33  ;;  %v754_v43 = vld [vmem:[#allocation8 + $0x40] sm:$0xff]  ;;  %v761_v5 = vld [vmem:[#allocation8 + $0x78] sm:$0xff] }
 0x148   :  { %1175 = vmatprep.subr.bf16.mxu1 %v1174_v37  ;;  %vm334_vm6 = vcmp.eq.f32.partialorder %v292_v45, %v322_v40  ;;  %v294_v49 = vpop.f32.mrb[10].mxu0  ;;  %1196 = vmatprep.subr.bf16.mxu0 %v1425_v9  ;;  %v750_v37 = vld [vmem:[#allocation8 + $0x20] sm:$0xff]  ;;  %v752_v40 = vld [vmem:[#allocation8 + $0x30] sm:$0xff] }
 0x149   :  { %v295_v52 = vpop.f32.mrb[11].mxu0  ;;  %883 = vmatprep.mubr.msk.f32.mxu1 %vm334_vm6, %v1424_v15  ;;  %v1221_v39 = vpack.c.bf16 %v751_v38, %v750_v37  ;;  %v1224_v42 = vpack.c.bf16 %v753_v41, %v752_v40 }
 0x14b   :  { %1177 = vmatpush3.bf16.msra.mxu1 %v1176_v44  ;;  %1198 = vmatpush3.bf16.msra.mxu0 %v1197_v16  ;;  %v755_v44 = vld [vmem:[#allocation8 + $0x48] sm:$0xff] }
 0x14c   :  { %1179 = vmatprep.subr.bf16.mxu1 %v1178_v46  ;;  %1199 = vmatprep.subr.bf16.mxu0 %v1425_v9  ;;  %v1227_v45 = vpack.c.bf16 %v755_v44, %v754_v43 }
 0x14f   :  { %1181 = vmatpush3.bf16.msra.mxu1 %v1180_v53 }
 0x150   :  { %1183 = vmatprep.subr.bf16.mxu1 %v1182_v54 }
 0x153   :  { %1185 = vmatpush3.bf16.msra.mxu1 %v1184_v63  ;;  %v757_v63 = vld [vmem:[#allocation8 + $0x58] sm:$0xff] }
 0x154   :  { %1187 = vmatprep.subr.bf16.mxu1 %v1186_v1  ;;  %v1230_v1 = vpack.c.bf16 %v757_v63, %v756_v62 }
 0x157   :  { %1189 = vmatpush3.bf16.msra.mxu1 %v1188_v4  ;;  %v760_v4 = vld [vmem:[#allocation8 + $0x70] sm:$0xff] }
 0x158   :  { %1214 = vmatprep.subr.bf16.mxu1 %v1425_v9  ;;  %v1236_v6 = vpack.c.bf16 %v761_v5, %v760_v4 }
 0x15a   :  { %884 = vmatmul.mubr.msk.f32.vlgmr.msra.gmra.mrb[2].mxu1 %vm333_vm7, %v1424_v15  ;;  %v661_v15 = vld [vmem:[#allocation7 + $0x30] sm:$0xff] }
 0x15b   :  { %v1200_v18 = vpack.c.bf16 %v662_v17, %v661_v15  ;;  %1091 = vmatprep.mubr.msk.f32.mxu1 %vm1426_vm8, %v1427_v29  ;;  %1216 = vmatpush3.bf16.msra.mxu1 %v1215_v34 }
 0x15c   :  { %1217 = vmatprep.subr.bf16.mxu1 %v1425_v9 }
 0x15d   :  { %1201 = vmatpush3.bf16.msra.mxu0 %v1200_v18 }
 0x15e   :  { %1202 = vmatprep.subr.bf16.mxu0 %v1425_v9 }
 0x15f   :  { %1219 = vmatpush3.bf16.msra.mxu1 %v1218_v36 }
 0x160   :  { %1220 = vmatprep.subr.bf16.mxu1 %v1425_v9 }
 0x161   :  { %1204 = vmatpush3.bf16.msra.mxu0 %v1203_v21 }
 0x162   :  { %1205 = vmatprep.subr.bf16.mxu0 %v1425_v9 }
 0x163   :  { %1222 = vmatpush3.bf16.msra.mxu1 %v1221_v39 }
 0x164   :  { %1223 = vmatprep.subr.bf16.mxu1 %v1425_v9 }
 0x165   :  { %1207 = vmatpush3.bf16.msra.mxu0 %v1206_v23 }
 0x166   :  { %1208 = vmatprep.subr.bf16.mxu0 %v1425_v9 }
 0x167   :  { %1225 = vmatpush3.bf16.msra.mxu1 %v1224_v42 }
 0x168   :  { %1226 = vmatprep.subr.bf16.mxu1 %v1425_v9 }
 0x169   :  { %1210 = vmatpush3.bf16.msra.mxu0 %v1209_v26 }
 0x16a   :  { %1211 = vmatprep.subr.bf16.mxu0 %v1425_v9 }
 0x16b   :  { %1228 = vmatpush3.bf16.msra.mxu1 %v1227_v45 }
 0x16c   :  { %1229 = vmatprep.subr.bf16.mxu1 %v1425_v9 }
 0x16d   :  { %1213 = vmatpush3.bf16.msra.mxu0 %v1212_v30 }
 0x16f   :  { %1231 = vmatpush3.bf16.msra.mxu1 %v1230_v1 }
 0x170   :  { %1232 = vmatprep.subr.bf16.mxu1 %v1425_v9 }
 0x173   :  { %1234 = vmatpush3.bf16.msra.mxu1 %v1233_v3 }
 0x174   :  { %1235 = vmatprep.subr.bf16.mxu1 %v1425_v9 }
 0x177   :  { %1237 = vmatpush3.bf16.msra.mxu1 %v1236_v6 }
 0x20d   :  { %v917_v46 = vpop.f32.mrb[0].mxu1 }
 0x20e   :  { %v918_v47 = vpop.f32.mrb[1].mxu1 }
 0x20f   :  { %v919_v48 = vadd.f32 %v918_v47, %v917_v46 }
 0x215   :  { %v952_v49 = vpop.f32.mrb[12].mxu0 }
 0x216   :  { %v953_v50 = vpop.f32.mrb[13].mxu0 }
 0x217   :  { %v954_v51 = vadd.f32 %v953_v50, %v952_v49 }
 0x219   :  { %v580_v52 = vadd.f32 %v954_v51, %v919_v48 }
 0x22d   :  { %v987_v53 = vpop.f32.mrb[2].mxu1 }
 0x22e   :  { %v988_v54 = vpop.f32.mrb[3].mxu1 }
 0x22f   :  { %v989_v55 = vadd.f32 %v988_v54, %v987_v53 }
 0x231   :  { %v650_v56 = vadd.f32 %v989_v55, %v580_v52 }
 0x233   :  { %1268 = vtanh.f32 %v650_v56 }
 0x23d   :  { %v1269_v57 = vpop.eup %1268 }
 0x23e   :  { %1057 = vmatmul.mubr.f32.vlgmr.msra.gmra.mrb[14].mxu0 %v1269_v57 }
 0x311   :  { %v741_v10 = vpop.f32.mrb[14].mxu0 }
 0x312   :  { %v742_v11 = vadd.f32 %v741_v10, %v674_v8  ;;  %v1058_v12 = vpop.f32.mrb[15].mxu0 }
 0x314   :  { %1270 = vtanh.f32 %v742_v11 }
 0x31e   :  { %v1271_v13 = vpop.eup %1270 }
 0x31f   :  { %1092 = vmatmul.mubr.f32.vlgmr.msra.gmra.mrb[4].mxu1 %v1271_v13 }
 0x3f2   :  { %v832_v16 = vpop.f32.mrb[4].mxu1 }
 0x3f3   :  { %v833_v15 = vadd.f32 %v832_v16, %v765_v60  ;;  %v1093_v17 = vpop.f32.mrb[5].mxu1 }
 0x3f5   :  { %1272 = vtanh.f32 %v833_v15 }
 0x3ff   :  { %v1273_v9 = vpop.eup %1272 }
 0x400   :  { %837 = vst [vmem:[#allocation11] sm:$0xff] %v1273_v9 }
 0x401   :  { %1395 = shalt.err (!%p1392_p2)
}
 0x402   :  { %s1396_s22 = scalar_lea.hbm %s1626_s7, 128 }
 0x403   :  { %p1397_p3 = scmp.ne.s32.totalorder %s1626_s7, %s1396_s22  ;;  %p1400_p4 = scmp.lt.u32.totalorder %s1396_s22, %s1626_s7 }
 0x405   :  { %p1402_p5 = pnand %p1400_p4, %p1397_p3 }
 0x407   :  { %1405 = shalt.err (!%p1402_p5)
}
 0x408   :  { %847 = dma.vmem_to_hbm [thread:$0]  %s845_s17, 128, %s1626_s7, [#allocation4]  }
 0x409   :  { %1412 = dma.done.wait [#allocation4], 128  }
 0x40a   :  { %1413 = vsyncadd [#allocation4], 4294967168 }
 0x40b   :  { %851 = vsyncpa [#allocation3], 1 }
 0x40c   :  { %852 = vsyncpa [#allocation6], 1 }
 0x40d   :  { %853 = vsyncpa [#allocation9], 1 }
 0x40e   :  { %854 = vsyncpa [#allocation4], 1 }

</bundles_post_ra>
